<compile_context>
chip_gen: v7x
topology: tpu7x:2x2x1
jax: 0.10.0
libtpu: 0.0.40
codegen_flags: <defaults>
</compile_context>

<pallas_src>
import jax
import jax.numpy as jnp
from jax import lax
from jax.experimental import pallas as pl
from jax.experimental.pallas import tpu as pltpu


def _make_kernel(K, Cin, Wp, Lo):
    KK = K * K

    def kernel(inp_ref, w_ref, bias_ref, o_ref, col_ref):
        # inp_ref:  (1, Cin, Lp)   fused (dec_idx*up(x), shortcut), padded + flattened
        # w_ref:    (Co, KK*Cin)   conv weight with BN scale folded in
        # bias_ref: (Co, 1)        folded eval-mode BN bias
        # o_ref:    (1, Co, Lo)    lane-dense output (reshapes to NCHW outside)
        # col_ref:  VMEM scratch (KK*Cin, Lo) — im2col columns
        inp = inp_ref[0]                                   # (Cin, Lp), a few vregs
        # im2col: 25 shifted slabs; stores are sublane-tile aligned (Cin == 8).
        for t in range(KK):
            kh, kw = t // K, t % K
            off = kh * Wp + kw
            col_ref[t * Cin:(t + 1) * Cin, :] = inp[:, off:off + Lo]
        # single MXU matmul, contraction = K*K*Cin
        acc = jnp.dot(w_ref[...], col_ref[...],
                      preferred_element_type=jnp.float32)  # (Co, Lo) f32
        y = acc + bias_ref[...]                            # folded BN bias
        o_ref[0] = jnp.minimum(jnp.maximum(y, 0.0), 6.0).astype(o_ref.dtype)

    return kernel


def indexed_upsample(x, shortcut, dec_idx_feat, w_hwio,
                     bn_gamma, bn_beta, bn_mean, bn_var, eps=1e-5,
                     compute_dtype=jnp.float32):
    """x: (N,Cx,Hin,Win), shortcut: (N,Cs,H,W), dec_idx_feat: (N,Cx,H,W) — NCHW.
    w_hwio: (K,K,Cx+Cs,Co).  Returns (N,Co,H,W) NCHW."""
    N, Cx, Hin, Win = x.shape
    _, Cs, H, W = shortcut.shape
    K = w_hwio.shape[0]
    Co = w_hwio.shape[-1]
    Cin = Cx + Cs
    P = (K - 1) // 2
    Wp = W + 2 * P                       # padded width (wrap columns dropped later)
    Lo = H * Wp                          # flattened output length (incl. wrap cols)
    Lp = (H + 2 * P + 1) * Wp            # +1 bottom row keeps wrap-column reads in bounds
    # max tap offset + Lo must stay inside the padded flat buffer
    assert (K - 1) * Wp + (K - 1) + Lo <= Lp

    # nearest-neighbour upsample (floor semantics == F.interpolate mode='nearest')
    hi = jnp.minimum((jnp.arange(H) * Hin) // H, Hin - 1)
    wi = jnp.minimum((jnp.arange(W) * Win) // W, Win - 1)
    x_up = x[:, :, hi][:, :, :, wi]                                   # (N, Cx, H, W)

    # indexed-upsample multiply + channel concat fused in the wrapper:
    # a single (N, Cin, Lp) stream enters the kernel (no separate dec_idx DMA).
    inp = jnp.concatenate([dec_idx_feat * x_up, shortcut], axis=1)    # (N, Cin, H, W)
    inp = jnp.pad(inp, ((0, 0), (0, 0), (P, P + 1), (P, P)))
    inp = inp.reshape(N, Cin, Lp).astype(compute_dtype)

    # fold eval-mode BN: scale into the conv weight, bias kept separate (f32)
    inv_std = 1.0 / jnp.sqrt(bn_var + eps)
    scale = bn_gamma * inv_std                                        # (Co,)
    bias = (bn_beta - bn_mean * scale).reshape(Co, 1).astype(jnp.float32)
    w_scaled = (w_hwio * scale).astype(compute_dtype)                 # (K,K,Cin,Co)
    # (K,K,Cin,Co) -> (Co, K*K*Cin); row order matches im2col rows t*Cin + cin
    w_full = jnp.transpose(w_scaled, (3, 0, 1, 2)).reshape(Co, K * K * Cin)

    kernel = _make_kernel(K, Cin, Wp, Lo)
    out_flat = pl.pallas_call(
        kernel,
        out_shape=jax.ShapeDtypeStruct((N, Co, Lo), jnp.float32),
        grid_spec=pltpu.PrefetchScalarGridSpec(
            num_scalar_prefetch=0,
            grid=(N,),
            in_specs=[
                pl.BlockSpec((1, Cin, Lp), lambda n: (n, 0, 0)),
                pl.BlockSpec((Co, K * K * Cin), lambda n: (0, 0)),
                pl.BlockSpec((Co, 1), lambda n: (0, 0)),
            ],
            out_specs=pl.BlockSpec((1, Co, Lo), lambda n: (n, 0, 0)),
            scratch_shapes=[pltpu.VMEM((K * K * Cin, Lo), compute_dtype)],
        ),
        compiler_params=pltpu.CompilerParams(
            dimension_semantics=("parallel",)),
    )(inp, w_full, bias)

    # (N, Co, Lo) -> drop per-row wrap columns -> NCHW directly (no transpose)
    return out_flat.reshape(N, Co, H, Wp)[:, :, :, :W]


def reference(x, shortcut, dec_idx_feat, w_hwio, gamma, beta, mean, var, eps=1e-5):
    """Pure-JAX reference of the module forward (eval mode)."""
    N, Cx, Hin, Win = x.shape
    _, Cs, H, W = shortcut.shape
    P = (w_hwio.shape[0] - 1) // 2
    xh = jnp.transpose(x, (0, 2, 3, 1))
    sc = jnp.transpose(shortcut, (0, 2, 3, 1))
    idx = jnp.transpose(dec_idx_feat, (0, 2, 3, 1))
    hi = jnp.minimum((jnp.arange(H) * Hin) // H, Hin - 1)
    wi = jnp.minimum((jnp.arange(W) * Win) // W, Win - 1)
    x_up = xh[:, hi][:, :, wi]
    inp = jnp.concatenate([idx * x_up, sc], axis=-1)
    out = lax.conv_general_dilated(inp, w_hwio, (1, 1), [(P, P), (P, P)],
                                   dimension_numbers=('NHWC', 'HWIO', 'NHWC'))
    s = gamma / jnp.sqrt(var + eps)
    out = out * s + (beta - mean * s)
    out = jnp.clip(out, 0.0, 6.0)
    return jnp.transpose(out, (0, 3, 1, 2))


if __name__ == "__main__":
    # small shapes: x is half-resolution, shortcut/dec_idx_feat full resolution
    N, Cx, Cs, Co = 2, 4, 4, 8
    Hin, Win, H, W, K = 8, 8, 16, 16, 5
    Cin = Cx + Cs

    key = jax.random.PRNGKey(0)
    k1, k2, k3, k4, k5, k6, k7, k8 = jax.random.split(key, 8)

    x = jax.random.normal(k1, (N, Cx, Hin, Win), jnp.float32)
    shortcut = jax.random.normal(k2, (N, Cs, H, W), jnp.float32)
    dec_idx_feat = jax.random.normal(k3, (N, Cx, H, W), jnp.float32)

    # kaiming-like init for the 5x5 conv (bias=False because of BN)
    fan_in = Cin * K * K
    w_hwio = jax.random.normal(k4, (K, K, Cin, Co), jnp.float32) * jnp.sqrt(2.0 / fan_in)
    # eval-mode BatchNorm parameters / running statistics
    bn_gamma = 1.0 + 0.1 * jax.random.normal(k5, (Co,), jnp.float32)
    bn_beta = 0.1 * jax.random.normal(k6, (Co,), jnp.float32)
    bn_mean = 0.1 * jax.random.normal(k7, (Co,), jnp.float32)
    bn_var = 0.5 + 0.5 * jnp.abs(jax.random.normal(k8, (Co,), jnp.float32))

    out = indexed_upsample(x, shortcut, dec_idx_feat, w_hwio,
                           bn_gamma, bn_beta, bn_mean, bn_var,
                           compute_dtype=jnp.float32)
    out = jax.block_until_ready(out)

    ref = reference(x, shortcut, dec_idx_feat, w_hwio,
                    bn_gamma, bn_beta, bn_mean, bn_var)
    ref = jax.block_until_ready(ref)

    assert out.shape == (N, Co, H, W), out.shape
    assert jnp.allclose(out, ref, atol=1e-4, rtol=1e-4), \
        float(jnp.max(jnp.abs(out - ref)))
    print("KERNEL_OK")
</pallas_src>

<mosaic_0001>
module attributes {stable_mosaic.version = 11 : i64} {
  func.func @kernel(%arg0: i32, %arg1: memref<1x8x420xf32, #tpu.memory_space<vmem>>, %arg2: memref<8x200xf32, #tpu.memory_space<vmem>>, %arg3: memref<8x1xf32, #tpu.memory_space<vmem>>, %arg4: memref<1x8x320xf32, #tpu.memory_space<vmem>>, %arg5: memref<200x320xf32, #tpu.memory_space<vmem>>) attributes {dimension_semantics = [#tpu.dimension_semantics<parallel>], iteration_bounds = array<i64: 2>, scalar_prefetch = 0 : i64, scratch_operands = 1 : i64, tpu.core_type = #tpu.core_type<tc>, window_params = [{transform_indices = @transform_0, window_bounds = array<i64: 1, 8, 420>}, {pipeline_mode = #tpu.pipeline_mode<synchronous>, transform_indices = @transform_1, window_bounds = array<i64: 8, 200>}, {pipeline_mode = #tpu.pipeline_mode<synchronous>, transform_indices = @transform_2, window_bounds = array<i64: 8, 1>}, {transform_indices = @transform_3, window_bounds = array<i64: 1, 8, 320>}]} {
    %c0 = arith.constant 0 : index
    %c0_0 = arith.constant 0 : index
    %c0_1 = arith.constant 0 : index
    %0 = vector.load %arg1[%c0, %c0_0, %c0_1] : memref<1x8x420xf32, #tpu.memory_space<vmem>>, vector<1x8x420xf32>
    %1 = vector.shape_cast %0 : vector<1x8x420xf32> to vector<8x420xf32>
    %2 = vector.extract_strided_slice %1 {offsets = [0, 0], sizes = [8, 320], strides = [1, 1]} : vector<8x420xf32> to vector<8x320xf32>
    %c0_2 = arith.constant 0 : index
    %c0_3 = arith.constant 0 : index
    %3 = vector.load %arg5[%c0_2, %c0_3] : memref<200x320xf32, #tpu.memory_space<vmem>>, vector<8x320xf32>
    tpu.vector_store %arg5[%c0_2, %c0_3], %2 {strides = array<i32>} : memref<200x320xf32, #tpu.memory_space<vmem>>, vector<8x320xf32>,
    %4 = vector.extract_strided_slice %1 {offsets = [0, 1], sizes = [8, 320], strides = [1, 1]} : vector<8x420xf32> to vector<8x320xf32>
    %c8 = arith.constant 8 : index
    %c0_4 = arith.constant 0 : index
    %5 = vector.load %arg5[%c8, %c0_4] : memref<200x320xf32, #tpu.memory_space<vmem>>, vector<8x320xf32>
    tpu.vector_store %arg5[%c8, %c0_4], %4 {strides = array<i32>} : memref<200x320xf32, #tpu.memory_space<vmem>>, vector<8x320xf32>,
    %6 = vector.extract_strided_slice %1 {offsets = [0, 2], sizes = [8, 320], strides = [1, 1]} : vector<8x420xf32> to vector<8x320xf32>
    %c16 = arith.constant 16 : index
    %c0_5 = arith.constant 0 : index
    %7 = vector.load %arg5[%c16, %c0_5] : memref<200x320xf32, #tpu.memory_space<vmem>>, vector<8x320xf32>
    tpu.vector_store %arg5[%c16, %c0_5], %6 {strides = array<i32>} : memref<200x320xf32, #tpu.memory_space<vmem>>, vector<8x320xf32>,
    %8 = vector.extract_strided_slice %1 {offsets = [0, 3], sizes = [8, 320], strides = [1, 1]} : vector<8x420xf32> to vector<8x320xf32>
    %c24 = arith.constant 24 : index
    %c0_6 = arith.constant 0 : index
    %9 = vector.load %arg5[%c24, %c0_6] : memref<200x320xf32, #tpu.memory_space<vmem>>, vector<8x320xf32>
    tpu.vector_store %arg5[%c24, %c0_6], %8 {strides = array<i32>} : memref<200x320xf32, #tpu.memory_space<vmem>>, vector<8x320xf32>,
    %10 = vector.extract_strided_slice %1 {offsets = [0, 4], sizes = [8, 320], strides = [1, 1]} : vector<8x420xf32> to vector<8x320xf32>
    %c32 = arith.constant 32 : index
    %c0_7 = arith.constant 0 : index
    %11 = vector.load %arg5[%c32, %c0_7] : memref<200x320xf32, #tpu.memory_space<vmem>>, vector<8x320xf32>
    tpu.vector_store %arg5[%c32, %c0_7], %10 {strides = array<i32>} : memref<200x320xf32, #tpu.memory_space<vmem>>, vector<8x320xf32>,
    %12 = vector.extract_strided_slice %1 {offsets = [0, 20], sizes = [8, 320], strides = [1, 1]} : vector<8x420xf32> to vector<8x320xf32>
    %c40 = arith.constant 40 : index
    %c0_8 = arith.constant 0 : index
    %13 = vector.load %arg5[%c40, %c0_8] : memref<200x320xf32, #tpu.memory_space<vmem>>, vector<8x320xf32>
    tpu.vector_store %arg5[%c40, %c0_8], %12 {strides = array<i32>} : memref<200x320xf32, #tpu.memory_space<vmem>>, vector<8x320xf32>,
    %14 = vector.extract_strided_slice %1 {offsets = [0, 21], sizes = [8, 320], strides = [1, 1]} : vector<8x420xf32> to vector<8x320xf32>
    %c48 = arith.constant 48 : index
    %c0_9 = arith.constant 0 : index
    %15 = vector.load %arg5[%c48, %c0_9] : memref<200x320xf32, #tpu.memory_space<vmem>>, vector<8x320xf32>
    tpu.vector_store %arg5[%c48, %c0_9], %14 {strides = array<i32>} : memref<200x320xf32, #tpu.memory_space<vmem>>, vector<8x320xf32>,
    %16 = vector.extract_strided_slice %1 {offsets = [0, 22], sizes = [8, 320], strides = [1, 1]} : vector<8x420xf32> to vector<8x320xf32>
    %c56 = arith.constant 56 : index
    %c0_10 = arith.constant 0 : index
    %17 = vector.load %arg5[%c56, %c0_10] : memref<200x320xf32, #tpu.memory_space<vmem>>, vector<8x320xf32>
    tpu.vector_store %arg5[%c56, %c0_10], %16 {strides = array<i32>} : memref<200x320xf32, #tpu.memory_space<vmem>>, vector<8x320xf32>,
    %18 = vector.extract_strided_slice %1 {offsets = [0, 23], sizes = [8, 320], strides = [1, 1]} : vector<8x420xf32> to vector<8x320xf32>
    %c64 = arith.constant 64 : index
    %c0_11 = arith.constant 0 : index
    %19 = vector.load %arg5[%c64, %c0_11] : memref<200x320xf32, #tpu.memory_space<vmem>>, vector<8x320xf32>
    tpu.vector_store %arg5[%c64, %c0_11], %18 {strides = array<i32>} : memref<200x320xf32, #tpu.memory_space<vmem>>, vector<8x320xf32>,
    %20 = vector.extract_strided_slice %1 {offsets = [0, 24], sizes = [8, 320], strides = [1, 1]} : vector<8x420xf32> to vector<8x320xf32>
    %c72 = arith.constant 72 : index
    %c0_12 = arith.constant 0 : index
    %21 = vector.load %arg5[%c72, %c0_12] : memref<200x320xf32, #tpu.memory_space<vmem>>, vector<8x320xf32>
    tpu.vector_store %arg5[%c72, %c0_12], %20 {strides = array<i32>} : memref<200x320xf32, #tpu.memory_space<vmem>>, vector<8x320xf32>,
    %22 = vector.extract_strided_slice %1 {offsets = [0, 40], sizes = [8, 320], strides = [1, 1]} : vector<8x420xf32> to vector<8x320xf32>
    %c80 = arith.constant 80 : index
    %c0_13 = arith.constant 0 : index
    %23 = vector.load %arg5[%c80, %c0_13] : memref<200x320xf32, #tpu.memory_space<vmem>>, vector<8x320xf32>
    tpu.vector_store %arg5[%c80, %c0_13], %22 {strides = array<i32>} : memref<200x320xf32, #tpu.memory_space<vmem>>, vector<8x320xf32>,
    %24 = vector.extract_strided_slice %1 {offsets = [0, 41], sizes = [8, 320], strides = [1, 1]} : vector<8x420xf32> to vector<8x320xf32>
    %c88 = arith.constant 88 : index
    %c0_14 = arith.constant 0 : index
    %25 = vector.load %arg5[%c88, %c0_14] : memref<200x320xf32, #tpu.memory_space<vmem>>, vector<8x320xf32>
    tpu.vector_store %arg5[%c88, %c0_14], %24 {strides = array<i32>} : memref<200x320xf32, #tpu.memory_space<vmem>>, vector<8x320xf32>,
    %26 = vector.extract_strided_slice %1 {offsets = [0, 42], sizes = [8, 320], strides = [1, 1]} : vector<8x420xf32> to vector<8x320xf32>
    %c96 = arith.constant 96 : index
    %c0_15 = arith.constant 0 : index
    %27 = vector.load %arg5[%c96, %c0_15] : memref<200x320xf32, #tpu.memory_space<vmem>>, vector<8x320xf32>
    tpu.vector_store %arg5[%c96, %c0_15], %26 {strides = array<i32>} : memref<200x320xf32, #tpu.memory_space<vmem>>, vector<8x320xf32>,
    %28 = vector.extract_strided_slice %1 {offsets = [0, 43], sizes = [8, 320], strides = [1, 1]} : vector<8x420xf32> to vector<8x320xf32>
    %c104 = arith.constant 104 : index
    %c0_16 = arith.constant 0 : index
    %29 = vector.load %arg5[%c104, %c0_16] : memref<200x320xf32, #tpu.memory_space<vmem>>, vector<8x320xf32>
    tpu.vector_store %arg5[%c104, %c0_16], %28 {strides = array<i32>} : memref<200x320xf32, #tpu.memory_space<vmem>>, vector<8x320xf32>,
    %30 = vector.extract_strided_slice %1 {offsets = [0, 44], sizes = [8, 320], strides = [1, 1]} : vector<8x420xf32> to vector<8x320xf32>
    %c112 = arith.constant 112 : index
    %c0_17 = arith.constant 0 : index
    %31 = vector.load %arg5[%c112, %c0_17] : memref<200x320xf32, #tpu.memory_space<vmem>>, vector<8x320xf32>
    tpu.vector_store %arg5[%c112, %c0_17], %30 {strides = array<i32>} : memref<200x320xf32, #tpu.memory_space<vmem>>, vector<8x320xf32>,
    %32 = vector.extract_strided_slice %1 {offsets = [0, 60], sizes = [8, 320], strides = [1, 1]} : vector<8x420xf32> to vector<8x320xf32>
    %c120 = arith.constant 120 : index
    %c0_18 = arith.constant 0 : index
    %33 = vector.load %arg5[%c120, %c0_18] : memref<200x320xf32, #tpu.memory_space<vmem>>, vector<8x320xf32>
    tpu.vector_store %arg5[%c120, %c0_18], %32 {strides = array<i32>} : memref<200x320xf32, #tpu.memory_space<vmem>>, vector<8x320xf32>,
    %34 = vector.extract_strided_slice %1 {offsets = [0, 61], sizes = [8, 320], strides = [1, 1]} : vector<8x420xf32> to vector<8x320xf32>
    %c128 = arith.constant 128 : index
    %c0_19 = arith.constant 0 : index
    %35 = vector.load %arg5[%c128, %c0_19] : memref<200x320xf32, #tpu.memory_space<vmem>>, vector<8x320xf32>
    tpu.vector_store %arg5[%c128, %c0_19], %34 {strides = array<i32>} : memref<200x320xf32, #tpu.memory_space<vmem>>, vector<8x320xf32>,
    %36 = vector.extract_strided_slice %1 {offsets = [0, 62], sizes = [8, 320], strides = [1, 1]} : vector<8x420xf32> to vector<8x320xf32>
    %c136 = arith.constant 136 : index
    %c0_20 = arith.constant 0 : index
    %37 = vector.load %arg5[%c136, %c0_20] : memref<200x320xf32, #tpu.memory_space<vmem>>, vector<8x320xf32>
    tpu.vector_store %arg5[%c136, %c0_20], %36 {strides = array<i32>} : memref<200x320xf32, #tpu.memory_space<vmem>>, vector<8x320xf32>,
    %38 = vector.extract_strided_slice %1 {offsets = [0, 63], sizes = [8, 320], strides = [1, 1]} : vector<8x420xf32> to vector<8x320xf32>
    %c144 = arith.constant 144 : index
    %c0_21 = arith.constant 0 : index
    %39 = vector.load %arg5[%c144, %c0_21] : memref<200x320xf32, #tpu.memory_space<vmem>>, vector<8x320xf32>
    tpu.vector_store %arg5[%c144, %c0_21], %38 {strides = array<i32>} : memref<200x320xf32, #tpu.memory_space<vmem>>, vector<8x320xf32>,
    %40 = vector.extract_strided_slice %1 {offsets = [0, 64], sizes = [8, 320], strides = [1, 1]} : vector<8x420xf32> to vector<8x320xf32>
    %c152 = arith.constant 152 : index
    %c0_22 = arith.constant 0 : index
    %41 = vector.load %arg5[%c152, %c0_22] : memref<200x320xf32, #tpu.memory_space<vmem>>, vector<8x320xf32>
    tpu.vector_store %arg5[%c152, %c0_22], %40 {strides = array<i32>} : memref<200x320xf32, #tpu.memory_space<vmem>>, vector<8x320xf32>,
    %42 = vector.extract_strided_slice %1 {offsets = [0, 80], sizes = [8, 320], strides = [1, 1]} : vector<8x420xf32> to vector<8x320xf32>
    %c160 = arith.constant 160 : index
    %c0_23 = arith.constant 0 : index
    %43 = vector.load %arg5[%c160, %c0_23] : memref<200x320xf32, #tpu.memory_space<vmem>>, vector<8x320xf32>
    tpu.vector_store %arg5[%c160, %c0_23], %42 {strides = array<i32>} : memref<200x320xf32, #tpu.memory_space<vmem>>, vector<8x320xf32>,
    %44 = vector.extract_strided_slice %1 {offsets = [0, 81], sizes = [8, 320], strides = [1, 1]} : vector<8x420xf32> to vector<8x320xf32>
    %c168 = arith.constant 168 : index
    %c0_24 = arith.constant 0 : index
    %45 = vector.load %arg5[%c168, %c0_24] : memref<200x320xf32, #tpu.memory_space<vmem>>, vector<8x320xf32>
    tpu.vector_store %arg5[%c168, %c0_24], %44 {strides = array<i32>} : memref<200x320xf32, #tpu.memory_space<vmem>>, vector<8x320xf32>,
    %46 = vector.extract_strided_slice %1 {offsets = [0, 82], sizes = [8, 320], strides = [1, 1]} : vector<8x420xf32> to vector<8x320xf32>
    %c176 = arith.constant 176 : index
    %c0_25 = arith.constant 0 : index
    %47 = vector.load %arg5[%c176, %c0_25] : memref<200x320xf32, #tpu.memory_space<vmem>>, vector<8x320xf32>
    tpu.vector_store %arg5[%c176, %c0_25], %46 {strides = array<i32>} : memref<200x320xf32, #tpu.memory_space<vmem>>, vector<8x320xf32>,
    %48 = vector.extract_strided_slice %1 {offsets = [0, 83], sizes = [8, 320], strides = [1, 1]} : vector<8x420xf32> to vector<8x320xf32>
    %c184 = arith.constant 184 : index
    %c0_26 = arith.constant 0 : index
    %49 = vector.load %arg5[%c184, %c0_26] : memref<200x320xf32, #tpu.memory_space<vmem>>, vector<8x320xf32>
    tpu.vector_store %arg5[%c184, %c0_26], %48 {strides = array<i32>} : memref<200x320xf32, #tpu.memory_space<vmem>>, vector<8x320xf32>,
    %50 = vector.extract_strided_slice %1 {offsets = [0, 84], sizes = [8, 320], strides = [1, 1]} : vector<8x420xf32> to vector<8x320xf32>
    %c192 = arith.constant 192 : index
    %c0_27 = arith.constant 0 : index
    %51 = vector.load %arg5[%c192, %c0_27] : memref<200x320xf32, #tpu.memory_space<vmem>>, vector<8x320xf32>
    tpu.vector_store %arg5[%c192, %c0_27], %50 {strides = array<i32>} : memref<200x320xf32, #tpu.memory_space<vmem>>, vector<8x320xf32>,
    %c0_28 = arith.constant 0 : index
    %c0_29 = arith.constant 0 : index
    %52 = vector.load %arg2[%c0_28, %c0_29] : memref<8x200xf32, #tpu.memory_space<vmem>>, vector<8x200xf32>
    %c0_30 = arith.constant 0 : index
    %c0_31 = arith.constant 0 : index
    %53 = vector.load %arg5[%c0_30, %c0_31] : memref<200x320xf32, #tpu.memory_space<vmem>>, vector<200x320xf32>
    %cst = arith.constant dense<0.000000e+00> : vector<8x320xf32>
    %54 = tpu.matmul %52, %53, %cst {dimension_numbers = #tpu.dot_dimension_numbers<[1], [0], [0], [1], [0, 0, 1, 1], [], []>} : vector<8x200xf32>, vector<200x320xf32>, vector<8x320xf32> -> vector<8x320xf32>
    %c0_32 = arith.constant 0 : index
    %c0_33 = arith.constant 0 : index
    %55 = vector.load %arg3[%c0_32, %c0_33] : memref<8x1xf32, #tpu.memory_space<vmem>>, vector<8x1xf32>
    %56 = vector.broadcast %55 : vector<8x1xf32> to vector<8x320xf32>
    %57 = arith.addf %54, %56 : vector<8x320xf32>
    %cst_34 = arith.constant 0.000000e+00 : f32
    %58 = vector.broadcast %cst_34 : f32 to vector<8x320xf32>
    %59 = arith.maximumf %57, %58 : vector<8x320xf32>
    %cst_35 = arith.constant 6.000000e+00 : f32
    %60 = vector.broadcast %cst_35 : f32 to vector<8x320xf32>
    %61 = arith.minimumf %59, %60 : vector<8x320xf32>
    %c0_36 = arith.constant 0 : index
    %c0_37 = arith.constant 0 : index
    %c0_38 = arith.constant 0 : index
    %62 = vector.load %arg4[%c0_36, %c0_37, %c0_38] : memref<1x8x320xf32, #tpu.memory_space<vmem>>, vector<1x8x320xf32>
    %63 = vector.shape_cast %62 : vector<1x8x320xf32> to vector<8x320xf32>
    %64 = vector.shape_cast %61 : vector<8x320xf32> to vector<1x8x320xf32>
    tpu.vector_store %arg4[%c0_36, %c0_37, %c0_38], %64 {strides = array<i32>} : memref<1x8x320xf32, #tpu.memory_space<vmem>>, vector<1x8x320xf32>,
    return
  }
  func.func @transform_0(%arg0: i32) -> (i32, i32, i32) {
    %c0_i32 = arith.constant 0 : i32
    %c0_i32_0 = arith.constant 0 : i32
    %c0_i32_1 = arith.constant 0 : i32
    return %arg0, %c0_i32, %c0_i32_0 : i32, i32, i32
  }
  func.func @transform_1(%arg0: i32) -> (i32, i32) {
    %c0_i32 = arith.constant 0 : i32
    %c0_i32_0 = arith.constant 0 : i32
    %c0_i32_1 = arith.constant 0 : i32
    return %c0_i32, %c0_i32_0 : i32, i32
  }
  func.func @transform_2(%arg0: i32) -> (i32, i32) {
    %c0_i32 = arith.constant 0 : i32
    %c0_i32_0 = arith.constant 0 : i32
    %c0_i32_1 = arith.constant 0 : i32
    return %c0_i32, %c0_i32_0 : i32, i32
  }
  func.func @transform_3(%arg0: i32) -> (i32, i32, i32) {
    %c0_i32 = arith.constant 0 : i32
    %c0_i32_0 = arith.constant 0 : i32
    %c0_i32_1 = arith.constant 0 : i32
    return %arg0, %c0_i32, %c0_i32_0 : i32, i32, i32
  }
}

</mosaic_0001>

<bundles_post_ra>
// kernel: tpu_custom_call.1
= control target key start
LH: loop header
LB: loop body
LE: loop exit
PB: predicated region body
PF: predicated region fallthrough
CT: control target
= control target key end

     0   :  { %8 = vsyncpa [#allocation4], 0  ;;  %s1669_s0 = inlined_call_operand.hbm [shape: f32[2,8,420], index: 0, kind: input, shape index: {}]   ;;  %s1670_s1 = inlined_call_operand.hbm [shape: f32[8,200], index: 1, kind: input, shape index: {}]   ;;  %s1671_s2 = inlined_call_operand.vmem [shape: f32[8,1], index: 2, kind: input, shape index: {}]   ;;  %s1672_s3 = inlined_call_operand.hbm [shape: f32[2,8,320], index: 3, kind: output, shape index: {}]  }
   0x1   :  { %10 = vsyncpa [#allocation4 + $0x1], 0 }
   0x2   :  { %11 = vsyncpa [#allocation7], 0 }
   0x3   :  { %12 = vsyncpa [#allocation5], 0 }
   0x4   :  { %14 = vsyncpa [#allocation5 + $0x1], 0  ;;  %s1286_s12 = smov 0   ;;  %s1288_s13 = smov 0  }
   0x5   :  { %s1290_s14 = smov 0   ;;  %s1292_s15 = smov 0  }
   0x6 LB: > { %s1307_s16 = sadd.s32 4294967295, %s1234_s15   ;;  %s918_s17 = sadd.s32 4294967294, %s1234_s15   ;;  %s1234_s15 = sphi %s1292_s15, %s1696_s15   ;;  %s1230_s14 = sphi %s1290_s14, %s1695_s14   ;;  %s1226_s13 = sphi %s1288_s13, %s1694_s13   ;;  %s1222_s12 = sphi %s1286_s12, %s1693_s12  }
   0x7   : > { %p40_p0 = scmp.ne.s32.totalorder %s1226_s13, %s1222_s12  ;;  %p1673_p1 = scmp.eq.s32.totalorder %s1307_s16, 0 }
   0x8   : > { %p112_p3 = scmp.eq.s32.totalorder %s918_s17, 1  ;;  %p919_p5 = scmp.ge.s32.totalorder %s1234_s15, 1 }
   0x9   : > { %p1316_p4 = por %p1673_p1, %p40_p0  ;;  %p119_p7 = scmp.lt.s32.totalorder %s1234_s15, 3 }
   0xa   : > { %p1321_p6 = por %p112_p3, %p40_p0  ;;  %s1236_s21 = smov [#allocation6]  }
   0xb   : > { %s1676_s18 = scalar_select %p1316_p4, 1, 0 }
   0xc   : > { %s1677_s19 = scalar_select %p1321_p6, 1, 0 }
   0xd   : > { %p1326_p8 = pnand %p919_p5, %p119_p7  ;;  %s132_s22 = sshll.u32 %s1236_s21, 4  ;;  %s133_s22 = int_to_ptr.vmem [resolvable:$true] %s132_s22 }
   0xe   : > { %s1334_s23 = sadd.s32 1, %s1234_s15   ;;  %s27_s27 = sadd.s32 1, %s1230_s14 }
   0xf   : > { %s1678_s20 = scalar_select %p1326_p8, 1, 0 }
  0x10   : > { %p1028_p10 = pneg %p1326_p8  ;;  %s24_s25 = ssub.s32 %s1234_s15, %s1334_s23 }
  0x11   : > { %p1344_p12 = scmp.eq.s32.totalorder %s24_s25, 0  ;;  %s1106_s30 = scalar_lea.hbm %s1670_s1, 256 }
  0x12   : > { %p1338_p11 = pnand %p1028_p10, %p1673_p1  ;;  %p1107_p0 = scmp.ne.s32.totalorder %s1670_s1, %s1106_s30 }
  0x13   : > { %s1680_s26 = scalar_select %p1344_p12, 1, 0 }
  0x14   : > { %p1108_p3 = pneg %p1338_p11  ;;  %p1113_p10 = scmp.lt.u32.totalorder %s1106_s30, %s1670_s1 }
  0x16   : > { %p1109_p5 = pnand %p1108_p3, %p1107_p0 }
  0x18   : > { %p1110_p7 = pneg %p1109_p5 }
  0x1a   : > { %p1115_p9 = pnand %p1113_p10, %p1110_p7 }
  0x1c   : > { %1118 = shalt.err (!%p1115_p9)
}
  0x1d   : > { %s1119_s8 = scalar_lea.vmem %s133_s22, 256  ;;  %p1127_p6 = scmp.lt.s32.totalorder %s133_s22, %s133_s22 }
  0x1e   : > { %p1120_p1 = scmp.ne.s32.totalorder %s133_s22, %s1119_s8  ;;  %p1128_p4 = scmp.lt.s32.totalorder %s1119_s8, %s1119_s8 }
  0x20   : > { %p1122_p2 = pnand %p1120_p1, %p1108_p3  ;;  %p1129_p8 = por %p1128_p4, %p1127_p6 }
  0x22   : > { %p1123_p13 = pneg %p1122_p2 }
  0x24   : > { %p1130_p12 = pnand %p1129_p8, %p1123_p13 }
  0x26   : > { %1133 = shalt.err (!%p1130_p12)
}
  0x27   : > { %1031 = dma.hbm_to_vmem [thread:$0]  (!%p1338_p11), %s1670_s1, 256, %s133_s22, [#allocation7]  }
  0x28   : > { %p1681_p1 = scmp.ne.s32.totalorder %s1680_s26, 0  ;;  %p35_p2 = scmp.eq.s32.totalorder %s1234_s15, 0 }
  0x29   : > { %p1682_p4 = scmp.ne.s32.totalorder %s1230_s14, %s1226_s13  ;;  %p1683_p6 = scmp.eq.s32.totalorder %s1307_s16, 1 }
  0x2a   : > { %s1370_s11 = scalar_select %p1681_p1, %s1230_s14, %s27_s27  }
  0x2b   : > { %p1378_p8 = por %p1683_p6, %p1682_p4  ;;  %p1041_p9 = scmp.lt.s32.totalorder %s1234_s15, 2 }
  0x2c   : > { %s146_s21 = sand.u32 1, %s1230_s14   ;;  %p1685_p12 = pmov %p1682_p4 }
  0x2d   : > { %s922_s24 = sshll.u32 %s146_s21, 5  ;;  %s933_s25 = sshll.u32 %s1234_s15, 9 }
  0x2e   : > { %p36_p13 = por %p35_p2, %p1685_p12  ;;  %s1391_s22 = scalar_lea.hbm %s1669_s0, %s933_s25 }
  0x2f   : > { %s150_s26 = scalar_lea.vmem [#allocation3], %s922_s24  ;;  %s147_s4 = scalar_lea.sflag [#allocation4], %s146_s21 }
  0x30   : > { %s158_s27 = sshll.u32 %s150_s26, 4  ;;  %p1393_p11 = pnand %p1041_p9, %p36_p13  ;;  %s1397_s27 = int_to_ptr.vmem [resolvable:$true] %s158_s27 }
  0x31   : > { %s1134_s5 = scalar_lea.hbm %s1391_s22, 512  ;;  %s1139_s8 = scalar_lea.hbm %s1669_s0, 1024 }
  0x32   : > { %p1135_p0 = scmp.ne.s32.totalorder %s1391_s22, %s1134_s5  ;;  %p1136_p3 = pneg %p1393_p11 }
  0x33   : > { %p1140_p10 = scmp.lt.u32.totalorder %s1391_s22, %s1669_s0  ;;  %p1141_p1 = scmp.lt.u32.totalorder %s1139_s8, %s1134_s5 }
  0x34   : > { %p1137_p5 = pnand %p1136_p3, %p1135_p0  ;;  %p1143_p4 = scmp.lt.u32.totalorder %s1134_s5, %s1391_s22 }
  0x35   : > { %p1142_p2 = por %p1141_p1, %p1140_p10 }
  0x36   : > { %p1138_p7 = pneg %p1137_p5 }
  0x37   : > { %p1144_p6 = por %p1143_p4, %p1142_p2 }
  0x39   : > { %p1145_p9 = pnand %p1144_p6, %p1138_p7 }
  0x3b   : > { %1148 = shalt.err (!%p1145_p9)
}
  0x3c   : > { %s1149_s21 = scalar_lea.vmem %s1397_s27, 512  ;;  %s1237_s24 = smov [#allocation3]  }
  0x3d   : > { %p1150_p12 = scmp.ne.s32.totalorder %s1397_s27, %s1149_s21  ;;  %s1154_s25 = sshll.u32 %s1237_s24, 4  ;;  %s1155_s25 = int_to_ptr.vmem [resolvable:$false] %s1154_s25 }
  0x3e   : > { %s1156_s28 = scalar_lea.vmem %s1155_s25, 1024  ;;  %p1157_p5 = scmp.lt.s32.totalorder %s1397_s27, %s1155_s25 }
  0x3f   : > { %p1152_p13 = pnand %p1150_p12, %p1136_p3  ;;  %p1158_p10 = scmp.lt.s32.totalorder %s1156_s28, %s1149_s21 }
  0x41   : > { %p1153_p0 = pneg %p1152_p13  ;;  %p1159_p1 = por %p1158_p10, %p1157_p5 }
  0x43   : > { %p1160_p2 = pnand %p1159_p1, %p1153_p0 }
  0x45   : > { %1163 = shalt.err (!%p1160_p2)
}
  0x46   : > { %1035 = dma.hbm_to_vmem [thread:$0]  (!%p1393_p11), %s1391_s22, 512, %s1397_s27, %s147_s4  }
  0x47   : > { %p1687_p7 = scmp.ne.s32.totalorder %s1678_s20, 0 }
  0x48   : > { %s1427_s29 = sand.u32 (!%p1687_p7), 1, %s1226_s13   ;;  %p1688_p3 = scmp.ne.s32.totalorder (!%p1687_p7), %s1676_s18, 0 }
  0x49   : > { %167 = sbr.rel (%p1687_p7) target bundleno = 594 (0x252), region = 32  ;;  %s926_s26 = sshll.u32 (!%p1687_p7), %s1427_s29, 5 }
  0x4a   : > { %s170_s5 = scalar_lea.sflag (!%p1687_p7), [#allocation4], %s1427_s29  ;;  %s1431_s6 = scalar_lea.vmem (!%p1687_p7), [#allocation3], %s926_s26 }
  0x50   : > { %1209 = dma.done.wait (%p1688_p3), %s170_s5, 512  }
  0x51   : > { %1211 = vsyncadd (%p1688_p3), %s170_s5, 4294966784  ;;  %p1689_p11 = scmp.eq.s32.totalorder %s1307_s16, 0 }
  0x53   : > { %1213 = dma.done.wait (%p1689_p11), [#allocation7], 256   ;;  %p1690_p4 = pmov %p1689_p11 }
  0x54   : > { %vm206_vm0 = vcmask 523264   ;;  %v1442_v0 = vld [vmem:[%s1431_s6 + $0x8] sm:$0xff]  ;;  %v1445_v1 = vld [vmem:[%s1431_s6] sm:$0xff]  ;;  %v1448_v2 = vld [vmem:[%s1431_s6 + $0x10] sm:$0xff]  ;;  %s1238_s20 = smov 127   ;;  %v1239_v3 = vmov 0.0|0.0  }
  0x55   : > { %1215 = vsyncadd (%p1690_p4), [#allocation7], 4294967040  ;;  %213 = vrot.lane.b32.xlu0 %v1442_v0, %s1238_s20  ;;  %211 = vrot.lane.b32.xlu1 %v1445_v1, %s1238_s20  ;;  %207 = vst.msk [vmem:[#allocation2 + $0x10] sm:$0xff] %vm206_vm0, %v1448_v2  ;;  %s1240_s18 = smov 126   ;;  %s1241_s22 = smov 125   ;;  %vm217_vm1 = vcmask 1039360  }
  0x56   : > { %982 = vmatprep.subr.bf16.mxu1 %v1239_v3  ;;  %s1242_s27 = smov 124   ;;  %s1243_s30 = smov 108   ;;  %vm232_vm2 = vcmask 1031168   ;;  %v1518_v11 = vld [vmem:[%s1431_s6 + $0x18] sm:$0xff]  ;;  %vm247_vm3 = vcmask 1022976   ;;  %vm262_vm4 = vcmask 1014784  }
  0x57   : > { %s1244_s4 = smov 107   ;;  %s1245_s7 = smov 106   ;;  %vm277_vm5 = vcmask 883712   ;;  %v587_v41 = vld [vmem:[#allocation6 + $0x8] sm:$0xff]  ;;  %vm669_vm6 = vcmask 588800   ;;  %vm292_vm7 = vcmask 875520  }
  0x58   : > { %s1246_s8 = smov 105   ;;  %s1247_s9 = smov 104   ;;  %928 = vmatprep.mubr.msk.f32.mxu0 %vm669_vm6, %v587_v41  ;;  %929 = vmatprep.mubr.msk.f32.mxu1 %vm669_vm6, %v587_v41  ;;  %vm307_vm8 = vcmask 867328   ;;  %v663_v50 = vld [vmem:[%s1671_s2] sm:$0xff]  ;;  %v1263_v53 = vmov 0   ;;  %vm322_vm9 = vcmask 859136  }
  0x59   : > { %215 = vrot.lane.b32.xlu0 %v1448_v2, %s1238_s20  ;;  %228 = vrot.lane.b32.xlu1 %v1442_v0, %s1240_s18  ;;  %s1248_s10 = smov 88   ;;  %s1249_s21 = smov 87   ;;  %vm337_vm10 = vcmask 850944   ;;  %vm352_vm11 = vcmask 719872   ;;  %vm367_vm12 = vcmask 711680   ;;  %vm382_vm13 = vcmask 703488  }
  0x5a   : > { %s1250_s24 = smov 86   ;;  %s1251_s25 = smov 85   ;;  %1104 = vset.pattern.permute.xlu1 %v1263_v53  ;;  %1105 = vset.pattern.permute.xlu0 %v1263_v53  ;;  %vm397_vm14 = vcmask 695296   ;;  %vm412_vm15 = vcmask 687104   ;;  %vm522_vm6 = vcmask 384000  }
  0x5b   : > { %s1252_s28 = smov 84   ;;  %s1253_s26 = smov 68  }
  0x5c   : > { %s1254_s5 = smov 67   ;;  %s1255_s20 = smov 66   ;;  %v590_v16 = vld [vmem:[#allocation2 + $0x10] sm:$0xff] }
  0x5d   : > { %230 = vrot.lane.b32.xlu0 %v1448_v2, %s1240_s18  ;;  %243 = vrot.lane.b32.xlu1 %v1442_v0, %s1241_s22  ;;  %s1260_s6 = smov 46  }
  0x61   : > { %245 = vrot.lane.b32.xlu0 %v1448_v2, %s1241_s22  ;;  %226 = vrot.lane.b32.xlu1 %v1445_v1, %s1240_s18  ;;  %s1256_s18 = smov 65  }
  0x65   : > { %241 = vrot.lane.b32.xlu0 %v1445_v1, %s1241_s22  ;;  %258 = vrot.lane.b32.xlu1 %v1442_v0, %s1242_s27  ;;  %s1257_s22 = smov 64  }
  0x69   : > { %260 = vrot.lane.b32.xlu0 %v1448_v2, %s1242_s27  ;;  %273 = vrot.lane.b32.xlu1 %v1442_v0, %s1243_s30 }
  0x6d   : > { %275 = vrot.lane.b32.xlu0 %v1448_v2, %s1243_s30  ;;  %256 = vrot.lane.b32.xlu1 %v1445_v1, %s1242_s27  ;;  %s1258_s27 = smov 48  }
  0x71   : > { %271 = vrot.lane.b32.xlu0 %v1445_v1, %s1243_s30  ;;  %288 = vrot.lane.b32.xlu1 %v1442_v0, %s1244_s4  ;;  %s1259_s30 = smov 47  }
  0x75   : > { %290 = vrot.lane.b32.xlu0 %v1448_v2, %s1244_s4  ;;  %303 = vrot.lane.b32.xlu1 %v1442_v0, %s1245_s7 }
  0x79   : > { %305 = vrot.lane.b32.xlu0 %v1448_v2, %s1245_s7  ;;  %286 = vrot.lane.b32.xlu1 %v1445_v1, %s1244_s4  ;;  %s1261_s4 = smov 45  }
  0x7d   : > { %301 = vrot.lane.b32.xlu0 %v1445_v1, %s1245_s7  ;;  %318 = vrot.lane.b32.xlu1 %v1442_v0, %s1246_s8  ;;  %s1262_s7 = smov 44  }
  0x81   : > { %320 = vrot.lane.b32.xlu0 %v1448_v2, %s1246_s8  ;;  %333 = vrot.lane.b32.xlu1 %v1442_v0, %s1247_s9 }
  0x85   : > { %335 = vrot.lane.b32.xlu0 %v1448_v2, %s1247_s9  ;;  %316 = vrot.lane.b32.xlu1 %v1445_v1, %s1246_s8 }
  0x89   : > { %331 = vrot.lane.b32.xlu0 %v1445_v1, %s1247_s9  ;;  %348 = vrot.lane.b32.xlu1 %v1442_v0, %s1248_s10 }
  0x8d   : > { %350 = vrot.lane.b32.xlu0 %v1448_v2, %s1248_s10  ;;  %363 = vrot.lane.b32.xlu1 %v1442_v0, %s1249_s21 }
  0x91   : > { %365 = vrot.lane.b32.xlu0 %v1448_v2, %s1249_s21  ;;  %346 = vrot.lane.b32.xlu1 %v1445_v1, %s1248_s10  ;;  %s1018_s10 = smul.u32 24, %s1427_s29 }
  0x95   : > { %361 = vrot.lane.b32.xlu0 %v1445_v1, %s1249_s21  ;;  %378 = vrot.lane.b32.xlu1 %v1442_v0, %s1250_s24  ;;  %s199_s21 = scalar_lea.vmem [#allocation8], %s1018_s10 }
  0x99   : > { %380 = vrot.lane.b32.xlu0 %v1448_v2, %s1250_s24  ;;  %393 = vrot.lane.b32.xlu1 %v1442_v0, %s1251_s25 }
  0x9d   : > { %395 = vrot.lane.b32.xlu0 %v1448_v2, %s1251_s25  ;;  %376 = vrot.lane.b32.xlu1 %v1445_v1, %s1250_s24  ;;  %s1019_s24 = smul.u32 384, %s1307_s16  ;;  %s1265_s16 = smov [#allocation8]  }
  0xa1   : > { %391 = vrot.lane.b32.xlu0 %v1445_v1, %s1251_s25  ;;  %408 = vrot.lane.b32.xlu1 %v1442_v0, %s1252_s28  ;;  %s838_s25 = sshll.u32 %s199_s21, 4  ;;  %s1626_s25 = int_to_ptr.vmem [resolvable:$true] %s838_s25 }
  0xa5   : > { %410 = vrot.lane.b32.xlu0 %v1448_v2, %s1252_s28  ;;  %423 = vrot.lane.b32.xlu1 %v1442_v0, %s1253_s26 }
  0xa9   : > { %425 = vrot.lane.b32.xlu0 %v1448_v2, %s1253_s26  ;;  %406 = vrot.lane.b32.xlu1 %v1445_v1, %s1252_s28 }
  0xad   : > { %421 = vrot.lane.b32.xlu0 %v1445_v1, %s1253_s26  ;;  %438 = vrot.lane.b32.xlu1 %v1442_v0, %s1254_s5 }
  0xb1   : > { %440 = vrot.lane.b32.xlu0 %v1448_v2, %s1254_s5  ;;  %453 = vrot.lane.b32.xlu1 %v1442_v0, %s1255_s20 }
  0xb5   : > { %455 = vrot.lane.b32.xlu0 %v1448_v2, %s1255_s20  ;;  %436 = vrot.lane.b32.xlu1 %v1445_v1, %s1254_s5  ;;  %s1624_s5 = scalar_lea.hbm %s1672_s3, %s1019_s24 }
  0xb9   : > { %451 = vrot.lane.b32.xlu0 %v1445_v1, %s1255_s20  ;;  %468 = vrot.lane.b32.xlu1 %v1442_v0, %s1256_s18  ;;  %s824_s20 = scalar_lea.sflag [#allocation5], %s1427_s29 }
  0xbd   : > { %470 = vrot.lane.b32.xlu0 %v1448_v2, %s1256_s18  ;;  %483 = vrot.lane.b32.xlu1 %v1442_v0, %s1257_s22 }
  0xc1   : > { %485 = vrot.lane.b32.xlu0 %v1448_v2, %s1257_s22  ;;  %466 = vrot.lane.b32.xlu1 %v1445_v1, %s1256_s18  ;;  %s1164_s18 = scalar_lea.vmem %s1626_s25, 384 }
  0xc2   : > { %p1165_p6 = scmp.ne.s32.totalorder %s1626_s25, %s1164_s18 }
  0xc4   : > { %p1166_p9 = pnand %p1165_p6, %p1378_p8 }
  0xc5   : > { %481 = vrot.lane.b32.xlu0 %v1445_v1, %s1257_s22  ;;  %498 = vrot.lane.b32.xlu1 %v1442_v0, %s1258_s27  ;;  %s1168_s22 = sshll.u32 %s1265_s16, 4  ;;  %s1169_s22 = int_to_ptr.vmem [resolvable:$false] %s1168_s22 }
  0xc6   : > { %p1167_p12 = pneg %p1166_p9  ;;  %p1171_p13 = scmp.lt.s32.totalorder %s1626_s25, %s1169_s22 }
  0xc7   : > { %v214_v4 = vpop.permute.xlu0 %213  ;;  %v212_v5 = vpop.permute.xlu1 %211 }
  0xc8   : > { %v218_v6 = vsel %vm217_vm1, %v212_v5, %v214_v4 }
  0xc9   : > { %500 = vrot.lane.b32.xlu0 %v1448_v2, %s1258_s27  ;;  %516 = vrot.lane.b32.xlu1 %v1442_v0, %s1259_s30  ;;  %v936_v12 = vpack.c.bf16 %v218_v6, %v1445_v1 }
  0xcb   : > { %v216_v7 = vpop.permute.xlu0 %215  ;;  %v229_v8 = vpop.permute.xlu1 %228 }
  0xcc   : > { %v219_v9 = vsel %vm217_vm1, %v214_v4, %v216_v7  ;;  %225 = vst.msk [vmem:[#allocation2 + $0x28] sm:$0xff] %vm206_vm0, %v216_v7  ;;  %vm427_vm1 = vcmask 556032  }
  0xcd   : > { %518 = vrot.lane.b32.xlu0 %v1448_v2, %s1259_s30  ;;  %496 = vrot.lane.b32.xlu1 %v1445_v1, %s1258_s27  ;;  %v934_v10 = vpack.c.bf16 %v219_v9, %v1442_v0 }
  0xcf   : > { %v231_v13 = vpop.permute.xlu0 %230  ;;  %v244_v14 = vpop.permute.xlu1 %243  ;;  %935 = vmatprep.subr.bf16.mxu0 %v934_v10 }
  0xd0   : > { %v234_v15 = vsel %vm232_vm2, %v229_v8, %v231_v13  ;;  %240 = vst.msk [vmem:[#allocation2 + $0x40] sm:$0xff] %vm206_vm0, %v231_v13  ;;  %937 = vmatpush1.bf16.msra.mxu0 %v936_v12 }
  0xd1   : > { %514 = vrot.lane.b32.xlu0 %v1445_v1, %s1259_s30  ;;  %502 = vrot.lane.b32.xlu1 %v1518_v11, %s1258_s27  ;;  %s1170_s27 = scalar_lea.vmem %s1169_s22, 768 }
  0xd2   : > { %p1172_p0 = scmp.lt.s32.totalorder %s1170_s27, %s1164_s18 }
  0xd3   : > { %v246_v17 = vpop.permute.xlu0 %245  ;;  %v227_v18 = vpop.permute.xlu1 %226  ;;  %v593_v19 = vld [vmem:[#allocation2 + $0x28] sm:$0xff] }
  0xd4   : > { %v249_v20 = vsel %vm247_vm3, %v244_v14, %v246_v17  ;;  %255 = vst.msk [vmem:[#allocation2 + $0x58] sm:$0xff] %vm206_vm0, %v246_v17  ;;  %v233_v21 = vsel %vm232_vm2, %v227_v18, %v229_v8  ;;  %v983_v22 = vpack.c.bf16 %v593_v19, %v590_v16  ;;  %vm442_vm2 = vcmask 547840   ;;  %p1173_p5 = por %p1172_p0, %p1171_p13 }
  0xd5   : > { %520 = vrot.lane.b32.xlu0 %v1518_v11, %s1259_s30  ;;  %534 = vrot.lane.b32.xlu1 %v1442_v0, %s1260_s6  ;;  %v938_v23 = vpack.c.bf16 %v249_v20, %v234_v15 }
  0xd6   : > { %984 = vmatpush1.bf16.msra.mxu1 %v983_v22  ;;  %p1174_p10 = pnand %p1173_p5, %p1167_p12 }
  0xd7   : > { %v242_v24 = vpop.permute.xlu0 %241  ;;  %v259_v25 = vpop.permute.xlu1 %258  ;;  %985 = vmatprep.subr.bf16.mxu1 %v1239_v3  ;;  %939 = vmatprep.subr.bf16.mxu0 %v938_v23  ;;  %v596_v30 = vld [vmem:[#allocation2 + $0x40] sm:$0xff] }
  0xd8   : > { %v248_v26 = vsel %vm247_vm3, %v242_v24, %v244_v14  ;;  %vm457_vm3 = vcmask 539648  }
  0xd9   : > { %536 = vrot.lane.b32.xlu0 %v1448_v2, %s1260_s6  ;;  %552 = vrot.lane.b32.xlu1 %v1442_v0, %s1261_s4  ;;  %v940_v27 = vpack.c.bf16 %v248_v26, %v233_v21 }
  0xdb   : > { %v261_v28 = vpop.permute.xlu0 %260  ;;  %v274_v29 = vpop.permute.xlu1 %273  ;;  %v599_v31 = vld [vmem:[#allocation2 + $0x58] sm:$0xff]  ;;  %941 = vmatpush1.bf16.msra.mxu0 %v940_v27 }
  0xdc   : > { %v264_v32 = vsel %vm262_vm4, %v259_v25, %v261_v28  ;;  %270 = vst.msk [vmem:[#allocation2 + $0x70] sm:$0xff] %vm206_vm0, %v261_v28  ;;  %v986_v33 = vpack.c.bf16 %v599_v31, %v596_v30 }
  0xdd   : > { %554 = vrot.lane.b32.xlu0 %v1448_v2, %s1261_s4  ;;  %532 = vrot.lane.b32.xlu1 %v1445_v1, %s1260_s6 }
  0xde   : > { %987 = vmatpush1.bf16.msra.mxu1 %v986_v33 }
  0xdf   : > { %v276_v34 = vpop.permute.xlu0 %275  ;;  %v257_v35 = vpop.permute.xlu1 %256  ;;  %988 = vmatprep.subr.bf16.mxu1 %v1239_v3 }
  0xe0   : > { %v279_v36 = vsel %vm277_vm5, %v274_v29, %v276_v34  ;;  %285 = vst.msk [vmem:[#allocation2 + $0x88] sm:$0xff] %vm206_vm0, %v276_v34  ;;  %v263_v37 = vsel %vm262_vm4, %v257_v35, %v259_v25  ;;  %vm472_vm4 = vcmask 531456  }
  0xe1   : > { %550 = vrot.lane.b32.xlu0 %v1445_v1, %s1261_s4  ;;  %538 = vrot.lane.b32.xlu1 %v1518_v11, %s1260_s6  ;;  %v942_v38 = vpack.c.bf16 %v279_v36, %v264_v32 }
  0xe3   : > { %v272_v39 = vpop.permute.xlu0 %271  ;;  %v289_v40 = vpop.permute.xlu1 %288  ;;  %943 = vmatprep.subr.bf16.mxu0 %v942_v38  ;;  %v602_v46 = vld [vmem:[#allocation2 + $0x70] sm:$0xff] }
  0xe4   : > { %v278_v42 = vsel %vm277_vm5, %v272_v39, %v274_v29  ;;  %vm504_vm5 = vcmask 392192  }
  0xe5   : > { %556 = vrot.lane.b32.xlu0 %v1518_v11, %s1261_s4  ;;  %570 = vrot.lane.b32.xlu1 %v1442_v0, %s1262_s7  ;;  %v944_v43 = vpack.c.bf16 %v278_v42, %v263_v37 }
  0xe7   : > { %v291_v44 = vpop.permute.xlu0 %290  ;;  %v304_v45 = vpop.permute.xlu1 %303  ;;  %v605_v47 = vld [vmem:[#allocation2 + $0x88] sm:$0xff]  ;;  %945 = vmatpush1.bf16.msra.mxu0 %v944_v43 }
  0xe8   : > { %v294_v48 = vsel %vm292_vm7, %v289_v40, %v291_v44  ;;  %300 = vst.msk [vmem:[#allocation2 + $0xa0] sm:$0xff] %vm206_vm0, %v291_v44  ;;  %v989_v49 = vpack.c.bf16 %v605_v47, %v602_v46 }
  0xe9   : > { %572 = vrot.lane.b32.xlu0 %v1448_v2, %s1262_s7  ;;  %568 = vrot.lane.b32.xlu1 %v1445_v1, %s1262_s7 }
  0xea   : > { %990 = vmatpush1.bf16.msra.mxu1 %v989_v49 }
  0xeb   : > { %v306_v51 = vpop.permute.xlu0 %305  ;;  %v287_v52 = vpop.permute.xlu1 %286  ;;  %991 = vmatprep.subr.bf16.mxu1 %v1239_v3 }
  0xec   : > { %v309_v54 = vsel %vm307_vm8, %v304_v45, %v306_v51  ;;  %315 = vst.msk [vmem:[#allocation2 + $0xb8] sm:$0xff] %vm206_vm0, %v306_v51  ;;  %v293_v55 = vsel %vm292_vm7, %v287_v52, %v289_v40  ;;  %vm540_vm7 = vcmask 375808  }
  0xed   : > { %574 = vrot.lane.b32.xlu0 %v1518_v11, %s1262_s7  ;;  %v946_v56 = vpack.c.bf16 %v309_v54, %v294_v48  ;;  %666 = vperm.xlu1 %1104, %v663_v50  }
  0xef   : > { %v302_v57 = vpop.permute.xlu0 %301  ;;  %v319_v58 = vpop.permute.xlu1 %318  ;;  %947 = vmatprep.subr.bf16.mxu0 %v946_v56  ;;  %v608_v63 = vld [vmem:[#allocation2 + $0xa0] sm:$0xff] }
  0xf0   : > { %v308_v59 = vsel %vm307_vm8, %v302_v57, %v304_v45  ;;  %vm558_vm8 = vcmask 367616  }
  0xf1   : > { %v948_v60 = vpack.c.bf16 %v308_v59, %v293_v55 }
  0xf3   : > { %v321_v61 = vpop.permute.xlu0 %320  ;;  %v334_v62 = vpop.permute.xlu1 %333  ;;  %v611_v0 = vld [vmem:[#allocation2 + $0xb8] sm:$0xff]  ;;  %949 = vmatpush1.bf16.msra.mxu0 %v948_v60 }
  0xf4   : > { %v324_v1 = vsel %vm322_vm9, %v319_v58, %v321_v61  ;;  %330 = vst.msk [vmem:[#allocation2 + $0xd0] sm:$0xff] %vm206_vm0, %v321_v61  ;;  %v992_v2 = vpack.c.bf16 %v611_v0, %v608_v63 }
  0xf6   : > { %993 = vmatpush1.bf16.msra.mxu1 %v992_v2 }
  0xf7   : > { %v336_v4 = vpop.permute.xlu0 %335  ;;  %v317_v5 = vpop.permute.xlu1 %316  ;;  %994 = vmatprep.subr.bf16.mxu1 %v1239_v3 }
  0xf8   : > { %v339_v6 = vsel %vm337_vm10, %v334_v62, %v336_v4  ;;  %345 = vst.msk [vmem:[#allocation2 + $0xe8] sm:$0xff] %vm206_vm0, %v336_v4  ;;  %v323_v7 = vsel %vm322_vm9, %v317_v5, %v319_v58  ;;  %vm576_vm9 = vcmask 359424  }
  0xf9   : > { %v950_v8 = vpack.c.bf16 %v339_v6, %v324_v1 }
  0xfb   : > { %v332_v9 = vpop.permute.xlu0 %331  ;;  %v349_v10 = vpop.permute.xlu1 %348  ;;  %951 = vmatprep.subr.bf16.mxu0 %v950_v8  ;;  %v614_v15 = vld [vmem:[#allocation2 + $0xd0] sm:$0xff] }
  0xfc   : > { %v338_v11 = vsel %vm337_vm10, %v332_v9, %v334_v62 }
  0xfd   : > { %v952_v12 = vpack.c.bf16 %v338_v11, %v323_v7 }
  0xff   : > { %v351_v13 = vpop.permute.xlu0 %350  ;;  %v364_v14 = vpop.permute.xlu1 %363  ;;  %v617_v16 = vld [vmem:[#allocation2 + $0xe8] sm:$0xff]  ;;  %953 = vmatpush1.bf16.msra.mxu0 %v952_v12 }
 0x100   : > { %v354_v17 = vsel %vm352_vm11, %v349_v10, %v351_v13  ;;  %360 = vst.msk [vmem:[#allocation2 + $0x100] sm:$0xff] %vm206_vm0, %v351_v13  ;;  %v995_v18 = vpack.c.bf16 %v617_v16, %v614_v15 }
 0x102   : > { %996 = vmatpush1.bf16.msra.mxu1 %v995_v18 }
 0x103   : > { %v366_v19 = vpop.permute.xlu0 %365  ;;  %v347_v20 = vpop.permute.xlu1 %346  ;;  %997 = vmatprep.subr.bf16.mxu1 %v1239_v3 }
 0x104   : > { %v369_v21 = vsel %vm367_vm12, %v364_v14, %v366_v19  ;;  %375 = vst.msk [vmem:[#allocation2 + $0x118] sm:$0xff] %vm206_vm0, %v366_v19  ;;  %v353_v22 = vsel %vm352_vm11, %v347_v20, %v349_v10 }
 0x105   : > { %v954_v23 = vpack.c.bf16 %v369_v21, %v354_v17 }
 0x107   : > { %v362_v24 = vpop.permute.xlu0 %361  ;;  %v379_v25 = vpop.permute.xlu1 %378  ;;  %955 = vmatprep.subr.bf16.mxu0 %v954_v23  ;;  %v620_v30 = vld [vmem:[#allocation2 + $0x100] sm:$0xff] }
 0x108   : > { %v368_v26 = vsel %vm367_vm12, %v362_v24, %v364_v14 }
 0x109   : > { %v956_v27 = vpack.c.bf16 %v368_v26, %v353_v22 }
 0x10b   : > { %v381_v28 = vpop.permute.xlu0 %380  ;;  %v394_v29 = vpop.permute.xlu1 %393  ;;  %v623_v31 = vld [vmem:[#allocation2 + $0x118] sm:$0xff]  ;;  %957 = vmatpush1.bf16.msra.mxu0 %v956_v27 }
 0x10c   : > { %v384_v32 = vsel %vm382_vm13, %v379_v25, %v381_v28  ;;  %390 = vst.msk [vmem:[#allocation2 + $0x130] sm:$0xff] %vm206_vm0, %v381_v28  ;;  %v998_v33 = vpack.c.bf16 %v623_v31, %v620_v30 }
 0x10e   : > { %999 = vmatpush1.bf16.msra.mxu1 %v998_v33 }
 0x10f   : > { %v396_v34 = vpop.permute.xlu0 %395  ;;  %v377_v35 = vpop.permute.xlu1 %376  ;;  %1000 = vmatprep.subr.bf16.mxu1 %v1239_v3 }
 0x110   : > { %v399_v36 = vsel %vm397_vm14, %v394_v29, %v396_v34  ;;  %405 = vst.msk [vmem:[#allocation2 + $0x148] sm:$0xff] %vm206_vm0, %v396_v34  ;;  %v383_v37 = vsel %vm382_vm13, %v377_v35, %v379_v25 }
 0x111   : > { %v958_v38 = vpack.c.bf16 %v399_v36, %v384_v32 }
 0x113   : > { %v392_v39 = vpop.permute.xlu0 %391  ;;  %v409_v40 = vpop.permute.xlu1 %408  ;;  %959 = vmatprep.subr.bf16.mxu0 %v958_v38  ;;  %v626_v45 = vld [vmem:[#allocation2 + $0x130] sm:$0xff] }
 0x114   : > { %v398_v41 = vsel %vm397_vm14, %v392_v39, %v394_v29 }
 0x115   : > { %v960_v42 = vpack.c.bf16 %v398_v41, %v383_v37 }
 0x117   : > { %v411_v43 = vpop.permute.xlu0 %410  ;;  %v424_v44 = vpop.permute.xlu1 %423  ;;  %v629_v46 = vld [vmem:[#allocation2 + $0x148] sm:$0xff]  ;;  %961 = vmatpush1.bf16.msra.mxu0 %v960_v42 }
 0x118   : > { %v414_v47 = vsel %vm412_vm15, %v409_v40, %v411_v43  ;;  %420 = vst.msk [vmem:[#allocation2 + $0x160] sm:$0xff] %vm206_vm0, %v411_v43  ;;  %v1001_v48 = vpack.c.bf16 %v629_v46, %v626_v45 }
 0x11a   : > { %1002 = vmatpush1.bf16.msra.mxu1 %v1001_v48 }
 0x11b   : > { %v426_v49 = vpop.permute.xlu0 %425  ;;  %v407_v50 = vpop.permute.xlu1 %406  ;;  %1003 = vmatprep.subr.bf16.mxu1 %v1239_v3 }
 0x11c   : > { %v429_v51 = vsel %vm427_vm1, %v424_v44, %v426_v49  ;;  %435 = vst.msk [vmem:[#allocation2 + $0x178] sm:$0xff] %vm206_vm0, %v426_v49  ;;  %v413_v52 = vsel %vm412_vm15, %v407_v50, %v409_v40 }
 0x11d   : > { %v962_v53 = vpack.c.bf16 %v429_v51, %v414_v47 }
 0x11f   : > { %v422_v54 = vpop.permute.xlu0 %421  ;;  %v439_v55 = vpop.permute.xlu1 %438  ;;  %963 = vmatprep.subr.bf16.mxu0 %v962_v53  ;;  %v632_v60 = vld [vmem:[#allocation2 + $0x160] sm:$0xff] }
 0x120   : > { %v428_v56 = vsel %vm427_vm1, %v422_v54, %v424_v44 }
 0x121   : > { %v964_v57 = vpack.c.bf16 %v428_v56, %v413_v52 }
 0x123   : > { %v441_v58 = vpop.permute.xlu0 %440  ;;  %v454_v59 = vpop.permute.xlu1 %453  ;;  %v635_v61 = vld [vmem:[#allocation2 + $0x178] sm:$0xff]  ;;  %965 = vmatpush1.bf16.msra.mxu0 %v964_v57 }
 0x124   : > { %v444_v62 = vsel %vm442_vm2, %v439_v55, %v441_v58  ;;  %450 = vst.msk [vmem:[#allocation2 + $0x190] sm:$0xff] %vm206_vm0, %v441_v58  ;;  %v1004_v63 = vpack.c.bf16 %v635_v61, %v632_v60 }
 0x126   : > { %1005 = vmatpush1.bf16.msra.mxu1 %v1004_v63 }
 0x127   : > { %v456_v0 = vpop.permute.xlu0 %455  ;;  %v437_v1 = vpop.permute.xlu1 %436  ;;  %1006 = vmatprep.subr.bf16.mxu1 %v1239_v3 }
 0x128   : > { %v459_v2 = vsel %vm457_vm3, %v454_v59, %v456_v0  ;;  %465 = vst.msk [vmem:[#allocation2 + $0x1a8] sm:$0xff] %vm206_vm0, %v456_v0  ;;  %v443_v4 = vsel %vm442_vm2, %v437_v1, %v439_v55 }
 0x129   : > { %v966_v5 = vpack.c.bf16 %v459_v2, %v444_v62 }
 0x12b   : > { %v452_v6 = vpop.permute.xlu0 %451  ;;  %v469_v7 = vpop.permute.xlu1 %468  ;;  %967 = vmatprep.subr.bf16.mxu0 %v966_v5  ;;  %v638_v12 = vld [vmem:[#allocation2 + $0x190] sm:$0xff] }
 0x12c   : > { %v458_v8 = vsel %vm457_vm3, %v452_v6, %v454_v59 }
 0x12d   : > { %v968_v9 = vpack.c.bf16 %v458_v8, %v443_v4  ;;  %v586_v4 = vld [vmem:[#allocation6] sm:$0xff] }
 0x12f   : > { %v471_v10 = vpop.permute.xlu0 %470  ;;  %v484_v11 = vpop.permute.xlu1 %483  ;;  %v641_v13 = vld [vmem:[#allocation2 + $0x1a8] sm:$0xff]  ;;  %969 = vmatpush1.bf16.msra.mxu0 %v968_v9  ;;  %v1264_v9 = vmov 0.0  }
 0x130   : > { %v474_v14 = vsel %vm472_vm4, %v469_v7, %v471_v10  ;;  %480 = vst.msk [vmem:[#allocation2 + $0x1c0] sm:$0xff] %vm206_vm0, %v471_v10  ;;  %v1007_v15 = vpack.c.bf16 %v641_v13, %v638_v12 }
 0x132   : > { %1008 = vmatpush1.bf16.msra.mxu1 %v1007_v15 }
 0x133   : > { %v486_v16 = vpop.permute.xlu0 %485  ;;  %v467_v17 = vpop.permute.xlu1 %466  ;;  %1009 = vmatprep.subr.bf16.mxu1 %v1239_v3 }
 0x134   : > { %v488_v18 = vsel %vm206_vm0, %v484_v11, %v486_v16  ;;  %494 = vst.msk [vmem:[#allocation2 + $0x1d8] sm:$0xff] %vm206_vm0, %v486_v16  ;;  %v473_v19 = vsel %vm472_vm4, %v467_v17, %v469_v7 }
 0x135   : > { %v970_v20 = vpack.c.bf16 %v488_v18, %v474_v14 }
 0x137   : > { %v482_v21 = vpop.permute.xlu0 %481  ;;  %v499_v22 = vpop.permute.xlu1 %498  ;;  %971 = vmatprep.subr.bf16.mxu0 %v970_v20  ;;  %v644_v27 = vld [vmem:[#allocation2 + $0x1c0] sm:$0xff] }
 0x138   : > { %v487_v23 = vsel %vm206_vm0, %v482_v21, %v484_v11 }
 0x139   : > { %v972_v24 = vpack.c.bf16 %v487_v23, %v473_v19 }
 0x13b   : > { %v501_v25 = vpop.permute.xlu0 %500  ;;  %v517_v26 = vpop.permute.xlu1 %516  ;;  %v647_v28 = vld [vmem:[#allocation2 + $0x1d8] sm:$0xff]  ;;  %973 = vmatpush1.bf16.msra.mxu0 %v972_v24 }
 0x13c   : > { %v506_v29 = vsel %vm504_vm5, %v499_v22, %v501_v25  ;;  %v1010_v30 = vpack.c.bf16 %v647_v28, %v644_v27 }
 0x13e   : > { %1011 = vmatpush1.bf16.msra.mxu1 %v1010_v30 }
 0x13f   : > { %v519_v31 = vpop.permute.xlu0 %518  ;;  %v497_v32 = vpop.permute.xlu1 %496  ;;  %1012 = vmatprep.subr.bf16.mxu1 %v1239_v3 }
 0x140   : > { %v524_v33 = vsel %vm522_vm6, %v517_v26, %v519_v31  ;;  %v505_v34 = vsel %vm504_vm5, %v497_v32, %v499_v22 }
 0x141   : > { %v974_v35 = vpack.c.bf16 %v524_v33, %v506_v29 }
 0x143   : > { %v515_v36 = vpop.permute.xlu0 %514  ;;  %v503_v37 = vpop.permute.xlu1 %502  ;;  %975 = vmatprep.subr.bf16.mxu0 %v974_v35 }
 0x144   : > { %v523_v38 = vsel %vm522_vm6, %v515_v36, %v517_v26  ;;  %v507_v39 = vsel %vm504_vm5, %v501_v25, %v503_v37 }
 0x145   : > { %513 = vst.msk [vmem:[#allocation2 + $0x1f0] sm:$0xff] %vm206_vm0, %v507_v39  ;;  %v976_v40 = vpack.c.bf16 %v523_v38, %v505_v34 }
 0x147   : > { %v521_v41 = vpop.permute.xlu0 %520  ;;  %v535_v42 = vpop.permute.xlu1 %534  ;;  %977 = vmatpush1.bf16.msra.mxu0 %v976_v40 }
 0x148   : > { %v525_v43 = vsel %vm522_vm6, %v519_v31, %v521_v41 }
 0x149   : > { %531 = vst.msk [vmem:[#allocation2 + $0x208] sm:$0xff] %vm206_vm0, %v525_v43 }
 0x14b   : > { %v537_v44 = vpop.permute.xlu0 %536  ;;  %v553_v45 = vpop.permute.xlu1 %552 }
 0x14c   : > { %v542_v46 = vsel %vm540_vm7, %v535_v42, %v537_v44  ;;  %v650_v51 = vld [vmem:[#allocation2 + $0x1f0] sm:$0xff] }
 0x14f   : > { %v555_v47 = vpop.permute.xlu0 %554  ;;  %v533_v48 = vpop.permute.xlu1 %532 }
 0x150   : > { %v560_v49 = vsel %vm558_vm8, %v553_v45, %v555_v47  ;;  %v541_v50 = vsel %vm540_vm7, %v533_v48, %v535_v42  ;;  %v653_v52 = vld [vmem:[#allocation2 + $0x208] sm:$0xff] }
 0x151   : > { %v1013_v53 = vpack.c.bf16 %v653_v52, %v650_v51  ;;  %v978_v54 = vpack.c.bf16 %v560_v49, %v542_v46 }
 0x153   : > { %v551_v55 = vpop.permute.xlu0 %550  ;;  %1014 = vmatpush1.bf16.msra.mxu1 %v1013_v53  ;;  %v539_v56 = vpop.permute.xlu1 %538  ;;  %979 = vmatprep.subr.bf16.mxu0 %v978_v54 }
 0x154   : > { %v559_v57 = vsel %vm558_vm8, %v551_v55, %v553_v45  ;;  %v543_v58 = vsel %vm540_vm7, %v537_v44, %v539_v56  ;;  %1015 = vmatprep.subr.bf16.mxu1 %v1239_v3 }
 0x155   : > { %549 = vst.msk [vmem:[#allocation2 + $0x220] sm:$0xff] %vm206_vm0, %v543_v58  ;;  %v980_v59 = vpack.c.bf16 %v559_v57, %v541_v50 }
 0x157   : > { %v557_v60 = vpop.permute.xlu0 %556  ;;  %v571_v61 = vpop.permute.xlu1 %570  ;;  %981 = vmatpush1.bf16.msra.mxu0 %v980_v59 }
 0x158   : > { %v561_v62 = vsel %vm558_vm8, %v555_v47, %v557_v60 }
 0x159   : > { %567 = vst.msk [vmem:[#allocation2 + $0x238] sm:$0xff] %vm206_vm0, %v561_v62 }
 0x15b   : > { %v573_v63 = vpop.permute.xlu0 %572  ;;  %v569_v0 = vpop.permute.xlu1 %568 }
 0x15c   : > { %v578_v1 = vsel %vm576_vm9, %v571_v61, %v573_v63  ;;  %v577_v2 = vsel %vm576_vm9, %v569_v0, %v571_v61  ;;  %v656_v6 = vld [vmem:[#allocation2 + $0x220] sm:$0xff] }
 0x15d   : > { %721 = vmatprep.subr.mxu0 %v578_v1 }
 0x15e   : > { %722 = vmatpush1.msra.mxu0 %v577_v2 }
 0x15f   : > { %v575_v3 = vpop.permute.xlu0 %574  ;;  %738 = vmatmul.mubr.f32.vlgmr.msra.gmra.mrb[0].mxu0 %v586_v4 }
 0x160   : > { %v579_v5 = vsel %vm576_vm9, %v573_v63, %v575_v3  ;;  %v659_v7 = vld [vmem:[#allocation2 + $0x238] sm:$0xff] }
 0x161   : > { %585 = vst.msk [vmem:[#allocation2 + $0x250] sm:$0xff] %vm206_vm0, %v579_v5  ;;  %v1016_v8 = vpack.c.bf16 %v659_v7, %v656_v6 }
 0x163   : > { %1017 = vmatpush1.bf16.msra.mxu1 %v1016_v8 }
 0x164   : > { %792 = vmatprep.subr.mxu1 %v1264_v9 }
 0x168   : > { %v662_v10 = vld [vmem:[#allocation2 + $0x250] sm:$0xff] }
 0x169   : > { %793 = vmatpush1.msra.mxu1 %v662_v10 }
 0x16a   : > { %809 = vmatmul.mubr.f32.vlgmr.msra.gmra.mrb[0].mxu1 %v586_v4 }
 0x16c   : > { %v667_v11 = vpop.permute.xlu1 %666 }
 0x232   : > { %v739_v12 = vpop.f32.mrb[0].mxu0 }
 0x233   : > { %v740_v13 = vadd.f32 %v739_v12, %v667_v11  ;;  %v741_v14 = vpop.f32.mrb[1].mxu0 }
 0x234   : > { %v742_v15 = vadd.f32 %v741_v14, %v667_v11 }
 0x235   : > { %v814_v16 = vmax.f32 %v740_v13, 0.0 }
 0x236   : > { %v815_v17 = vmax.f32 %v742_v15, 0.0 }
 0x237   : > { %v817_v18 = vmin.f32 %v814_v16, 6.0 }
 0x238   : > { %v818_v19 = vmin.f32 %v815_v17, 6.0 }
 0x239   : > { %820 = vst [vmem:[%s199_s21] sm:$0xff] %v817_v18 }
 0x23a   : > { %821 = vst [vmem:[%s199_s21 + $0x8] sm:$0xff] %v818_v19 }
 0x23d   : > { %v810_v20 = vpop.f32.mrb[0].mxu1 }
 0x23e   : > { %v811_v21 = vadd.f32 %v810_v20, %v667_v11  ;;  %v812_v22 = vpop.f32.mrb[1].mxu1 }
 0x240   : > { %v816_v23 = vmax.f32 %v811_v21, 0.0 }
 0x242   : > { %v819_v24 = vmin.f32 %v816_v23, 6.0 }
 0x244   : > { %822 = vst.msk [vmem:[%s199_s21 + $0x10] sm:$0xff] %vm206_vm0, %v819_v24 }
 0x245   : > { %1177 = shalt.err (!%p1174_p10)
}
 0x246   : > { %s1178_s29 = scalar_lea.hbm %s1624_s5, 384  ;;  %s1182_s4 = scalar_lea.hbm %s1672_s3, 768 }
 0x247   : > { %p1179_p1 = scmp.ne.s32.totalorder %s1624_s5, %s1178_s29  ;;  %p1183_p3 = scmp.lt.u32.totalorder %s1624_s5, %s1672_s3 }
 0x248   : > { %p1184_p11 = scmp.lt.u32.totalorder %s1182_s4, %s1178_s29  ;;  %p1186_p6 = scmp.lt.u32.totalorder %s1178_s29, %s1624_s5 }
 0x249   : > { %p1180_p2 = pnand %p1179_p1, %p1378_p8 }
 0x24a   : > { %p1185_p4 = por %p1184_p11, %p1183_p3 }
 0x24b   : > { %p1181_p7 = pneg %p1180_p2 }
 0x24c   : > { %p1187_p9 = por %p1186_p6, %p1185_p4 }
 0x24e   : > { %p1188_p12 = pnand %p1187_p9, %p1181_p7 }
 0x250   : > { %1191 = shalt.err (!%p1188_p12)
}
 0x251   : > { %1026 = dma.vmem_to_hbm [thread:$0]  (%p1378_p8), %s1626_s25, 384, %s1624_s5, %s824_s20  }
 0x252 PF: > { %s850_s9 = sand.u32 1, %s1222_s12   ;;  %p1691_p13 = scmp.ne.s32.totalorder %s1677_s19, 0 }
 0x253   : > { %p1692_p0 = scmp.ge.s32.totalorder %s1234_s15, 2  ;;  %s851_s10 = scalar_lea.sflag [#allocation5], %s850_s9 }
 0x255   : > { %p1037_p5 = pnand %p1692_p0, %p1691_p13 }
 0x257   : > { %1217 = dma.done.wait (!%p1037_p5), %s851_s10, 384  }
 0x258   : > { %1219 = vsyncadd (!%p1037_p5), %s851_s10, 4294966912  ;;  %p17_p10 = scmp.ge.s32.totalorder %s1334_s23, 4   ;;  %s1693_s12 = smov %s1226_s13 }
 0x259   : > { %s1694_s13 = smov %s1230_s14  ;;  %s1695_s14 = smov %s1370_s11 }
 0x25a   : > { %s1696_s15 = smov %s1334_s23  ;;  %19 = sbr.rel (!%p17_p10) target bundleno = 6 (0x6), region = 81 }
 0x261   :  { %856 = vsyncpa [#allocation4], 1 }
 0x262   :  { %858 = vsyncpa [#allocation4 + $0x1], 1 }
 0x263   :  { %859 = vsyncpa [#allocation7], 1 }
 0x264   :  { %860 = vsyncpa [#allocation5], 1 }
 0x265   :  { %862 = vsyncpa [#allocation5 + $0x1], 1 }

</bundles_post_ra>
